<compile_context>
chip_gen: v7x
topology: tpu7x:2x2x1
jax: 0.10.0
libtpu: 0.0.40
codegen_flags: <defaults>
</compile_context>

<pallas_src>
import functools

import jax
import jax.numpy as jnp
from jax.experimental import pallas as pl
from jax.experimental.pallas import tpu as pltpu

_LANE = 512            # last-dim tile width: multiple of 128 -> lane-dense stores
_MAX_BLOCK_ROWS = 512  # (512, 512) f32 tile = 1 MiB; 2x double-buffered in/out = 4 MiB VMEM


def _hash_u32(x):
    """Cheap avalanching integer hash (uint32 -> uint32); VPU-only ops."""
    x = x ^ (x >> 16)
    x = x * jnp.uint32(0x45D9F3B)
    x = x ^ (x >> 16)
    x = x * jnp.uint32(0x45D9F3B)
    x = x ^ (x >> 16)
    return x


def _inv_normal_cdf(p):
    """Acklam's rational approximation of the standard-normal inverse CDF.

    Uses only polynomials + one log/sqrt per element (no sin/cos Box-Muller), which
    keeps the single EUP slot light and is portable across TPU generations.
    """
    a0, a1, a2, a3, a4, a5 = (-3.969683028665376e+01, 2.209460984245205e+02,
                              -2.759285104469687e+02, 1.383577518672690e+02,
                              -3.066479806614716e+01, 2.506628277459239e+00)
    b0, b1, b2, b3, b4 = (-5.447609879822406e+01, 1.615858368580409e+02,
                          -1.556989798598866e+02, 6.680131188771972e+01,
                          -1.328068155288572e+01)
    c0, c1, c2, c3, c4, c5 = (-7.784894002430293e-03, -3.223964580411365e-01,
                              -2.400758277161838e+00, -2.549732539343734e+00,
                              4.374664141464968e+00, 2.938163982698783e+00)
    d0, d1, d2, d3 = (7.784695709041462e-03, 3.224671290700398e-01,
                      2.445134137142996e+00, 3.754408661907416e+00)
    p_low = 0.02425

    # Central region.
    q = p - 0.5
    r = q * q
    num_c = ((((a0 * r + a1) * r + a2) * r + a3) * r + a4) * r + a5
    den_c = ((((b0 * r + b1) * r + b2) * r + b3) * r + b4) * r + 1.0
    x_central = q * num_c / den_c

    # Tails, computed once via symmetry (t = min(p, 1 - p)).
    t = jnp.maximum(jnp.minimum(p, 1.0 - p), 1e-12)
    s = jnp.sqrt(-2.0 * jnp.log(t))
    num_t = ((((c0 * s + c1) * s + c2) * s + c3) * s + c4) * s + c5
    den_t = (((d0 * s + d1) * s + d2) * s + d3) * s + 1.0
    x_tail_lo = num_t / den_t                      # lower-tail value (negative)
    x_tail = jnp.where(p < 0.5, x_tail_lo, -x_tail_lo)

    return jnp.where(t < p_low, x_tail, x_central)


def _gaussian_noise_kernel(seed_ref, x_ref, o_ref, *, std, block_rows, lane):
    # Globally-unique 32-bit counter per element => noise is i.i.d. across tiles and
    # safe under "parallel" megacore execution (no per-tile seed replay).
    row0 = pl.program_id(0) * block_rows
    r_idx = jax.lax.broadcasted_iota(jnp.int32, (block_rows, lane), 0)
    c_idx = jax.lax.broadcasted_iota(jnp.int32, (block_rows, lane), 1)
    counter = (row0 + r_idx) * lane + c_idx

    seed_u = seed_ref[0].astype(jnp.uint32)
    mixed = counter.astype(jnp.uint32) ^ (seed_u * jnp.uint32(0x9E3779B9)
                                          + jnp.uint32(0x85EBCA6B))
    bits = _hash_u32(mixed)

    # 24 bits -> uniform in (0, 1) -> N(0, 1) via inverse CDF.
    mant = (bits & jnp.uint32(0x00FFFFFF)).astype(jnp.int32)
    u = (mant.astype(jnp.float32) + 0.5) * jnp.float32(1.0 / 16777216.0)
    noise = std * _inv_normal_cdf(u)

    if o_ref.dtype == jnp.float32:
        o_ref[...] = x_ref[...] + noise                    # no astype round-trip for f32
    else:
        o_ref[...] = x_ref[...] + noise.astype(o_ref.dtype)  # single downcast for bf16 etc.


def gaussian_noise(x, seed, std=0.05):
    """Adds N(0, std) noise to x (any shape, e.g. NCHW), matching GaussianNoise.forward."""
    orig_shape = x.shape
    total = x.size

    # Lane-dense 2D slab: (rows, _LANE), padded at the tail if needed.
    rows = pl.cdiv(total, _LANE)
    padded = rows * _LANE
    x_flat = x.reshape(-1)
    if padded != total:
        x_flat = jnp.pad(x_flat, (0, padded - total))
    x2d = x_flat.reshape(rows, _LANE)

    block_rows = _MAX_BLOCK_ROWS if rows >= _MAX_BLOCK_ROWS else rows
    grid = (pl.cdiv(rows, block_rows),)

    seed_arr = jnp.asarray([seed], dtype=jnp.int32)

    kernel = functools.partial(_gaussian_noise_kernel, std=float(std),
                               block_rows=block_rows, lane=_LANE)

    out2d = pl.pallas_call(
        kernel,
        out_shape=jax.ShapeDtypeStruct(x2d.shape, x2d.dtype),
        grid=grid,
        in_specs=[
            pl.BlockSpec(memory_space=pltpu.MemorySpace.SMEM),   # seed scalar
            pl.BlockSpec((block_rows, _LANE), lambda i: (i, 0)),  # x tile (double-buffered)
        ],
        out_specs=pl.BlockSpec((block_rows, _LANE), lambda i: (i, 0)),
        compiler_params=pltpu.CompilerParams(
            dimension_semantics=("parallel",)),
    )(seed_arr, x2d)

    out_flat = out2d.reshape(-1)
    if padded != total:
        out_flat = out_flat[:total]
    return out_flat.reshape(orig_shape)


if __name__ == "__main__":
    key = jax.random.PRNGKey(0)
    batch_size = 2
    input_shape = (1, 28, 28)   # module default input_shape
    std = 0.05

    x = jax.random.normal(key, (batch_size,) + input_shape, dtype=jnp.float32)

    out = gaussian_noise(x, seed=0, std=std)
    out = jax.block_until_ready(out)

    # Sanity checks: shape/dtype preserved, residual noise has roughly the right scale.
    assert out.shape == x.shape and out.dtype == x.dtype
    noise = out - x
    noise_mean = float(jnp.mean(noise))
    noise_std = float(jnp.std(noise))
    assert abs(noise_mean) < 0.02, noise_mean
    assert 0.5 * std < noise_std < 1.5 * std, noise_std

    # Determinism: same seed -> identical noise.
    out2 = jax.block_until_ready(gaussian_noise(x, seed=0, std=std))
    assert bool(jnp.all(out2 == out))

    print("KERNEL_OK")
</pallas_src>

<mosaic_0001>
module attributes {stable_mosaic.version = 11 : i64} {
  func.func @_gaussian_noise_kernel(%arg0: i32, %arg1: memref<1xi32, #tpu.memory_space<smem>>, %arg2: memref<4x512xf32, #tpu.memory_space<vmem>>, %arg3: memref<4x512xf32, #tpu.memory_space<vmem>>) attributes {dimension_semantics = [#tpu.dimension_semantics<parallel>], iteration_bounds = array<i64: 1>, scalar_prefetch = 0 : i64, scratch_operands = 0 : i64, tpu.core_type = #tpu.core_type<tc>, window_params = [{transform_indices = @transform_0, window_bounds = array<i64: 1>}, {transform_indices = @transform_1, window_bounds = array<i64: 4, 512>}, {transform_indices = @transform_2, window_bounds = array<i64: 4, 512>}]} {
    %c4_i32 = arith.constant 4 : i32
    %0 = arith.muli %arg0, %c4_i32 : i32
    %1 = tpu.iota {dimensions = array<i32: 0>} : vector<4x512xi32>
    %2 = tpu.iota {dimensions = array<i32: 1>} : vector<4x512xi32>
    %3 = vector.broadcast %0 : i32 to vector<4x512xi32>
    %4 = arith.addi %3, %1 : vector<4x512xi32>
    %c512_i32 = arith.constant 512 : i32
    %5 = vector.broadcast %c512_i32 : i32 to vector<4x512xi32>
    %6 = arith.muli %4, %5 : vector<4x512xi32>
    %7 = arith.addi %6, %2 : vector<4x512xi32>
    %c0 = arith.constant 0 : index
    %8 = memref.load %arg1[%c0] : memref<1xi32, #tpu.memory_space<smem>>
    %c-1640531527_i32 = arith.constant -1640531527 : i32
    %9 = arith.muli %8, %c-1640531527_i32 : i32
    %c-2048144789_i32 = arith.constant -2048144789 : i32
    %10 = arith.addi %9, %c-2048144789_i32 : i32
    %11 = vector.broadcast %10 : i32 to vector<4x512xi32>
    %12 = arith.xori %7, %11 : vector<4x512xi32>
    %c16_i32 = arith.constant 16 : i32
    %13 = vector.broadcast %c16_i32 : i32 to vector<4x512xi32>
    %14 = arith.shrui %12, %13 : vector<4x512xi32>
    %15 = arith.xori %12, %14 : vector<4x512xi32>
    %c73244475_i32 = arith.constant 73244475 : i32
    %16 = vector.broadcast %c73244475_i32 : i32 to vector<4x512xi32>
    %17 = arith.muli %15, %16 : vector<4x512xi32>
    %c16_i32_0 = arith.constant 16 : i32
    %18 = vector.broadcast %c16_i32_0 : i32 to vector<4x512xi32>
    %19 = arith.shrui %17, %18 : vector<4x512xi32>
    %20 = arith.xori %17, %19 : vector<4x512xi32>
    %c73244475_i32_1 = arith.constant 73244475 : i32
    %21 = vector.broadcast %c73244475_i32_1 : i32 to vector<4x512xi32>
    %22 = arith.muli %20, %21 : vector<4x512xi32>
    %c16_i32_2 = arith.constant 16 : i32
    %23 = vector.broadcast %c16_i32_2 : i32 to vector<4x512xi32>
    %24 = arith.shrui %22, %23 : vector<4x512xi32>
    %25 = arith.xori %22, %24 : vector<4x512xi32>
    %c16777215_i32 = arith.constant 16777215 : i32
    %26 = vector.broadcast %c16777215_i32 : i32 to vector<4x512xi32>
    %27 = arith.andi %25, %26 : vector<4x512xi32>
    %28 = arith.sitofp %27 : vector<4x512xi32> to vector<4x512xf32>
    %cst = arith.constant 5.000000e-01 : f32
    %29 = vector.broadcast %cst : f32 to vector<4x512xf32>
    %30 = arith.addf %28, %29 : vector<4x512xf32>
    %cst_3 = arith.constant 5.96046448E-8 : f32
    %31 = vector.broadcast %cst_3 : f32 to vector<4x512xf32>
    %32 = arith.mulf %30, %31 : vector<4x512xf32>
    %cst_4 = arith.constant 5.000000e-01 : f32
    %33 = vector.broadcast %cst_4 : f32 to vector<4x512xf32>
    %34 = arith.subf %32, %33 : vector<4x512xf32>
    %35 = arith.mulf %34, %34 : vector<4x512xf32>
    %cst_5 = arith.constant -39.6968307 : f32
    %36 = vector.broadcast %cst_5 : f32 to vector<4x512xf32>
    %37 = arith.mulf %36, %35 : vector<4x512xf32>
    %cst_6 = arith.constant 220.946106 : f32
    %38 = vector.broadcast %cst_6 : f32 to vector<4x512xf32>
    %39 = arith.addf %37, %38 : vector<4x512xf32>
    %40 = arith.mulf %39, %35 : vector<4x512xf32>
    %cst_7 = arith.constant -275.928497 : f32
    %41 = vector.broadcast %cst_7 : f32 to vector<4x512xf32>
    %42 = arith.addf %40, %41 : vector<4x512xf32>
    %43 = arith.mulf %42, %35 : vector<4x512xf32>
    %cst_8 = arith.constant 138.357758 : f32
    %44 = vector.broadcast %cst_8 : f32 to vector<4x512xf32>
    %45 = arith.addf %43, %44 : vector<4x512xf32>
    %46 = arith.mulf %45, %35 : vector<4x512xf32>
    %cst_9 = arith.constant -30.6647987 : f32
    %47 = vector.broadcast %cst_9 : f32 to vector<4x512xf32>
    %48 = arith.addf %46, %47 : vector<4x512xf32>
    %49 = arith.mulf %48, %35 : vector<4x512xf32>
    %cst_10 = arith.constant 2.50662827 : f32
    %50 = vector.broadcast %cst_10 : f32 to vector<4x512xf32>
    %51 = arith.addf %49, %50 : vector<4x512xf32>
    %cst_11 = arith.constant -54.4760971 : f32
    %52 = vector.broadcast %cst_11 : f32 to vector<4x512xf32>
    %53 = arith.mulf %52, %35 : vector<4x512xf32>
    %cst_12 = arith.constant 161.585831 : f32
    %54 = vector.broadcast %cst_12 : f32 to vector<4x512xf32>
    %55 = arith.addf %53, %54 : vector<4x512xf32>
    %56 = arith.mulf %55, %35 : vector<4x512xf32>
    %cst_13 = arith.constant -155.698975 : f32
    %57 = vector.broadcast %cst_13 : f32 to vector<4x512xf32>
    %58 = arith.addf %56, %57 : vector<4x512xf32>
    %59 = arith.mulf %58, %35 : vector<4x512xf32>
    %cst_14 = arith.constant 66.8013153 : f32
    %60 = vector.broadcast %cst_14 : f32 to vector<4x512xf32>
    %61 = arith.addf %59, %60 : vector<4x512xf32>
    %62 = arith.mulf %61, %35 : vector<4x512xf32>
    %cst_15 = arith.constant -13.2806816 : f32
    %63 = vector.broadcast %cst_15 : f32 to vector<4x512xf32>
    %64 = arith.addf %62, %63 : vector<4x512xf32>
    %65 = arith.mulf %64, %35 : vector<4x512xf32>
    %cst_16 = arith.constant 1.000000e+00 : f32
    %66 = vector.broadcast %cst_16 : f32 to vector<4x512xf32>
    %67 = arith.addf %65, %66 : vector<4x512xf32>
    %68 = arith.mulf %34, %51 : vector<4x512xf32>
    %69 = arith.divf %68, %67 : vector<4x512xf32>
    %cst_17 = arith.constant 1.000000e+00 : f32
    %70 = vector.broadcast %cst_17 : f32 to vector<4x512xf32>
    %71 = arith.subf %70, %32 : vector<4x512xf32>
    %72 = arith.minimumf %32, %71 : vector<4x512xf32>
    %cst_18 = arith.constant 9.99999996E-13 : f32
    %73 = vector.broadcast %cst_18 : f32 to vector<4x512xf32>
    %74 = arith.maximumf %72, %73 : vector<4x512xf32>
    %75 = math.log %74 : vector<4x512xf32>
    %cst_19 = arith.constant -2.000000e+00 : f32
    %76 = vector.broadcast %cst_19 : f32 to vector<4x512xf32>
    %77 = arith.mulf %76, %75 : vector<4x512xf32>
    %78 = math.sqrt %77 : vector<4x512xf32>
    %cst_20 = arith.constant -0.0077848942 : f32
    %79 = vector.broadcast %cst_20 : f32 to vector<4x512xf32>
    %80 = arith.mulf %79, %78 : vector<4x512xf32>
    %cst_21 = arith.constant -0.322396457 : f32
    %81 = vector.broadcast %cst_21 : f32 to vector<4x512xf32>
    %82 = arith.addf %80, %81 : vector<4x512xf32>
    %83 = arith.mulf %82, %78 : vector<4x512xf32>
    %cst_22 = arith.constant -2.40075827 : f32
    %84 = vector.broadcast %cst_22 : f32 to vector<4x512xf32>
    %85 = arith.addf %83, %84 : vector<4x512xf32>
    %86 = arith.mulf %85, %78 : vector<4x512xf32>
    %cst_23 = arith.constant -2.54973245 : f32
    %87 = vector.broadcast %cst_23 : f32 to vector<4x512xf32>
    %88 = arith.addf %86, %87 : vector<4x512xf32>
    %89 = arith.mulf %88, %78 : vector<4x512xf32>
    %cst_24 = arith.constant 4.37466431 : f32
    %90 = vector.broadcast %cst_24 : f32 to vector<4x512xf32>
    %91 = arith.addf %89, %90 : vector<4x512xf32>
    %92 = arith.mulf %91, %78 : vector<4x512xf32>
    %cst_25 = arith.constant 2.938164 : f32
    %93 = vector.broadcast %cst_25 : f32 to vector<4x512xf32>
    %94 = arith.addf %92, %93 : vector<4x512xf32>
    %cst_26 = arith.constant 0.00778469583 : f32
    %95 = vector.broadcast %cst_26 : f32 to vector<4x512xf32>
    %96 = arith.mulf %95, %78 : vector<4x512xf32>
    %cst_27 = arith.constant 0.322467119 : f32
    %97 = vector.broadcast %cst_27 : f32 to vector<4x512xf32>
    %98 = arith.addf %96, %97 : vector<4x512xf32>
    %99 = arith.mulf %98, %78 : vector<4x512xf32>
    %cst_28 = arith.constant 2.44513416 : f32
    %100 = vector.broadcast %cst_28 : f32 to vector<4x512xf32>
    %101 = arith.addf %99, %100 : vector<4x512xf32>
    %102 = arith.mulf %101, %78 : vector<4x512xf32>
    %cst_29 = arith.constant 3.7544086 : f32
    %103 = vector.broadcast %cst_29 : f32 to vector<4x512xf32>
    %104 = arith.addf %102, %103 : vector<4x512xf32>
    %105 = arith.mulf %104, %78 : vector<4x512xf32>
    %cst_30 = arith.constant 1.000000e+00 : f32
    %106 = vector.broadcast %cst_30 : f32 to vector<4x512xf32>
    %107 = arith.addf %105, %106 : vector<4x512xf32>
    %108 = arith.divf %94, %107 : vector<4x512xf32>
    %cst_31 = arith.constant 5.000000e-01 : f32
    %109 = vector.broadcast %cst_31 : f32 to vector<4x512xf32>
    %110 = arith.cmpf olt, %32, %109 : vector<4x512xf32>
    %cst_32 = arith.constant 0.000000e+00 : f32
    %111 = vector.broadcast %cst_32 : f32 to vector<4x512xf32>
    %112 = arith.subf %111, %108 : vector<4x512xf32>
    %113 = arith.select %110, %108, %112 : vector<4x512xi1>, vector<4x512xf32>
    %cst_33 = arith.constant 2.425000e-02 : f32
    %114 = vector.broadcast %cst_33 : f32 to vector<4x512xf32>
    %115 = arith.cmpf olt, %74, %114 : vector<4x512xf32>
    %116 = arith.select %115, %113, %69 : vector<4x512xi1>, vector<4x512xf32>
    %cst_34 = arith.constant 5.000000e-02 : f32
    %117 = vector.broadcast %cst_34 : f32 to vector<4x512xf32>
    %118 = arith.mulf %117, %116 : vector<4x512xf32>
    %c0_35 = arith.constant 0 : index
    %c0_36 = arith.constant 0 : index
    %119 = vector.load %arg2[%c0_35, %c0_36] : memref<4x512xf32, #tpu.memory_space<vmem>>, vector<4x512xf32>
    %120 = arith.addf %119, %118 : vector<4x512xf32>
    %c0_37 = arith.constant 0 : index
    %c0_38 = arith.constant 0 : index
    %121 = vector.load %arg3[%c0_37, %c0_38] : memref<4x512xf32, #tpu.memory_space<vmem>>, vector<4x512xf32>
    tpu.vector_store %arg3[%c0_37, %c0_38], %120 {strides = array<i32>} : memref<4x512xf32, #tpu.memory_space<vmem>>, vector<4x512xf32>,
    return
  }
  func.func @transform_0(%arg0: i32) -> i32 {
    %c0_i32 = arith.constant 0 : i32
    %c0_i32_0 = arith.constant 0 : i32
    return %c0_i32 : i32
  }
  func.func @transform_1(%arg0: i32) -> (i32, i32) {
    %c0_i32 = arith.constant 0 : i32
    %c0_i32_0 = arith.constant 0 : i32
    return %arg0, %c0_i32 : i32, i32
  }
  func.func @transform_2(%arg0: i32) -> (i32, i32) {
    %c0_i32 = arith.constant 0 : i32
    %c0_i32_0 = arith.constant 0 : i32
    return %arg0, %c0_i32 : i32, i32
  }
}

</mosaic_0001>

<bundles_post_ra>
// kernel: tpu_custom_call.1
= control target key start
LH: loop header
LB: loop body
LE: loop exit
PB: predicated region body
PF: predicated region fallthrough
CT: control target
= control target key end

     0   :  { %8 = vsyncpa [#allocation4], 0  ;;  %s709_s0 = inlined_call_operand.<no memory space> [shape: s32[1], index: 0, kind: input, shape index: {}]   ;;  %s710_s1 = inlined_call_operand.hbm [shape: f32[4,512], index: 1, kind: input, shape index: {}]   ;;  %s711_s2 = inlined_call_operand.hbm [shape: f32[4,512], index: 2, kind: output, shape index: {}]  }
   0x1   :  { %9 = vsyncpa [#allocation5], 0  ;;  %s467_s9 = smov [#allocation3]   ;;  %s419_s13 = scalar_lea.hbm %s710_s1, 256 }
   0x2   :  { %s18_s10 = sshll.u32 %s467_s9, 4  ;;  %p420_p0 = scmp.ne.s32.totalorder %s710_s1, %s419_s13  ;;  %s19_s10 = int_to_ptr.vmem [resolvable:$true] %s18_s10 }
   0x3   :  { %p423_p1 = scmp.lt.u32.totalorder %s419_s13, %s710_s1 }
   0x5   :  { %p425_p2 = pnand %p423_p1, %p420_p0 }
   0x7   :  { %428 = shalt.err (!%p425_p2)
}
   0x8   :  { %s429_s18 = scalar_lea.vmem %s19_s10, 256  ;;  %p434_p4 = scmp.lt.s32.totalorder %s19_s10, %s19_s10 }
   0x9   :  { %p430_p3 = scmp.ne.s32.totalorder %s19_s10, %s429_s18  ;;  %p435_p5 = scmp.lt.s32.totalorder %s429_s18, %s429_s18 }
   0xb   :  { %p436_p6 = por %p435_p5, %p434_p4 }
   0xd   :  { %p437_p7 = pnand %p436_p6, %p430_p3 }
   0xf   :  { %440 = shalt.err (!%p437_p7)
}
  0x10   :  { %21 = dma.hbm_to_vmem [thread:$0]  %s710_s1, 256, %s19_s10, [#allocation4]  }
  0x11   :  { %463 = dma.done.wait [#allocation4], 256  }
  0x12   :  { %464 = vsyncadd [#allocation4], 4294967040  ;;  %v26_v0 = vlaneseq  ;;  %s41_s23 = smul.u32 2654435769, %s709_s0  ;;  %s468_s0 = smov [#allocation6]  }
  0x13   :  { %s372_s1 = sshll.u32 %s468_s0, 4  ;;  %s373_s1 = int_to_ptr.vmem [resolvable:$true] %s372_s1 }
  0x14   :  { %v27_v1 = vshrl.u32 %v26_v0, 7  ;;  %v29_v2 = vand.u32 127, %v26_v0  ;;  %s42_s24 = sadd.s32 2246822507, %s41_s23  ;;  %s441_s25 = scalar_lea.vmem %s373_s1, 256 }
  0x15   :  { %v43_v7 = vstv %s42_s24  ;;  %p442_p8 = scmp.ne.s32.totalorder %s373_s1, %s441_s25  ;;  %p446_p9 = scmp.lt.s32.totalorder %s373_s1, %s373_s1 }
  0x16   :  { %v30_v3 = vadd.s32 128, %v29_v2  ;;  %v31_v4 = vadd.s32 256, %v29_v2  ;;  %v32_v5 = vadd.s32 384, %v29_v2  ;;  %v35_v6 = vmul.u32 512, %v27_v1  ;;  %p447_p10 = scmp.lt.s32.totalorder %s441_s25, %s441_s25 }
  0x18   :  { %v36_v8 = vadd.s32 %v35_v6, %v29_v2  ;;  %v37_v9 = vadd.s32 %v35_v6, %v30_v3  ;;  %v38_v10 = vadd.s32 %v35_v6, %v31_v4  ;;  %v39_v11 = vadd.s32 %v35_v6, %v32_v5  ;;  %p448_p11 = por %p447_p10, %p446_p9 }
  0x1a   :  { %v44_v12 = vxor.u32 %v43_v7, %v36_v8  ;;  %v45_v13 = vxor.u32 %v43_v7, %v37_v9  ;;  %v46_v14 = vxor.u32 %v43_v7, %v38_v10  ;;  %v47_v15 = vxor.u32 %v43_v7, %v39_v11  ;;  %p449_p12 = pnand %p448_p11, %p442_p8 }
  0x1c   :  { %v48_v16 = vshrl.u32 %v44_v12, 16  ;;  %v49_v17 = vshrl.u32 %v45_v13, 16  ;;  %v50_v18 = vshrl.u32 %v46_v14, 16  ;;  %v51_v19 = vshrl.u32 %v47_v15, 16 }
  0x1e   :  { %v52_v20 = vxor.u32 %v48_v16, %v44_v12  ;;  %v53_v21 = vxor.u32 %v49_v17, %v45_v13  ;;  %v54_v22 = vxor.u32 %v50_v18, %v46_v14  ;;  %v55_v23 = vxor.u32 %v51_v19, %v47_v15 }
  0x20   :  { %v56_v24 = vmul.u32 73244475, %v52_v20  ;;  %v57_v25 = vmul.u32 73244475, %v53_v21 }
  0x21   :  { %v58_v26 = vmul.u32 73244475, %v54_v22  ;;  %v59_v27 = vmul.u32 73244475, %v55_v23 }
  0x22   :  { %v60_v28 = vshrl.u32 %v56_v24, 16  ;;  %v61_v29 = vshrl.u32 %v57_v25, 16 }
  0x23   :  { %v62_v30 = vshrl.u32 %v58_v26, 16  ;;  %v63_v31 = vshrl.u32 %v59_v27, 16 }
  0x24   :  { %v64_v32 = vxor.u32 %v60_v28, %v56_v24  ;;  %v65_v33 = vxor.u32 %v61_v29, %v57_v25 }
  0x25   :  { %v66_v34 = vxor.u32 %v62_v30, %v58_v26  ;;  %v67_v35 = vxor.u32 %v63_v31, %v59_v27 }
  0x26   :  { %v68_v36 = vmul.u32 73244475, %v64_v32  ;;  %v69_v37 = vmul.u32 73244475, %v65_v33 }
  0x27   :  { %v70_v38 = vmul.u32 73244475, %v66_v34  ;;  %v71_v39 = vmul.u32 73244475, %v67_v35 }
  0x28   :  { %v72_v40 = vshrl.u32 %v68_v36, 16  ;;  %v73_v41 = vshrl.u32 %v69_v37, 16 }
  0x29   :  { %v74_v42 = vshrl.u32 %v70_v38, 16  ;;  %v75_v43 = vshrl.u32 %v71_v39, 16 }
  0x2a   :  { %v76_v44 = vxor.u32 %v72_v40, %v68_v36  ;;  %v77_v45 = vxor.u32 %v73_v41, %v69_v37 }
  0x2b   :  { %v78_v46 = vxor.u32 %v74_v42, %v70_v38  ;;  %v79_v47 = vxor.u32 %v75_v43, %v71_v39 }
  0x2c   :  { %v80_v48 = vand.u32 16777215, %v76_v44  ;;  %v81_v49 = vand.u32 16777215, %v77_v45 }
  0x2d   :  { %v82_v50 = vand.u32 16777215, %v78_v46  ;;  %v83_v51 = vand.u32 16777215, %v79_v47 }
  0x2e   :  { %v84_v52 = vcvt.s32.f32 %v80_v48  ;;  %v85_v53 = vcvt.s32.f32 %v81_v49 }
  0x2f   :  { %v86_v54 = vcvt.s32.f32 %v82_v50  ;;  %v87_v55 = vcvt.s32.f32 %v83_v51 }
  0x30   :  { %v88_v56 = vadd.f32 0.5, %v84_v52  ;;  %v89_v57 = vadd.f32 0.5, %v85_v53 }
  0x31   :  { %v90_v58 = vadd.f32 0.5, %v86_v54  ;;  %v91_v59 = vadd.f32 0.5, %v87_v55 }
  0x32   :  { %v499_v60 = vmul.f32 5.9604645e-08, %v88_v56  ;;  %v501_v61 = vmul.f32 5.9604645e-08, %v89_v57 }
  0x33   :  { %v503_v62 = vmul.f32 5.9604645e-08, %v90_v58  ;;  %v505_v63 = vmul.f32 5.9604645e-08, %v91_v59 }
  0x34   :  { %v508_v0 = vadd.f32 -0.5, %v499_v60  ;;  %v511_v1 = vadd.f32 -0.5, %v501_v61  ;;  %v196_v11 = vsub.f32 1.0, %v499_v60  ;;  %v197_v13 = vsub.f32 1.0, %v501_v61 }
  0x35   :  { %v514_v2 = vadd.f32 -0.5, %v503_v62  ;;  %v517_v3 = vadd.f32 -0.5, %v505_v63  ;;  %v198_v14 = vsub.f32 1.0, %v503_v62  ;;  %v199_v16 = vsub.f32 1.0, %v505_v63 }
  0x36   :  { %v521_v4 = vmul.f32 %v508_v0, %v508_v0  ;;  %v525_v5 = vmul.f32 %v511_v1, %v511_v1  ;;  %v545_v20 = vmin.f32 %v499_v60, %v196_v11  ;;  %v549_v23 = vmin.f32 %v501_v61, %v197_v13 }
  0x37   :  { %v529_v6 = vmul.f32 %v514_v2, %v514_v2  ;;  %v533_v7 = vmul.f32 %v517_v3, %v517_v3  ;;  %v553_v25 = vmin.f32 %v503_v62, %v198_v14  ;;  %v558_v28 = vmin.f32 %v505_v63, %v199_v16 }
  0x38   :  { %v144_v8 = vmul.f32 -54.476097, %v521_v4  ;;  %v145_v9 = vmul.f32 -54.476097, %v525_v5  ;;  %v104_v17 = vmul.f32 -39.69683, %v521_v4 }
  0x39   :  { %v146_v10 = vmul.f32 -54.476097, %v529_v6  ;;  %v147_v12 = vmul.f32 -54.476097, %v533_v7  ;;  %v105_v21 = vmul.f32 -39.69683, %v525_v5 }
  0x3a   :  { %v148_v15 = vadd.f32 161.58583, %v144_v8  ;;  %v149_v18 = vadd.f32 161.58583, %v145_v9  ;;  %v106_v24 = vmul.f32 -39.69683, %v529_v6 }
  0x3b   :  { %v150_v19 = vadd.f32 161.58583, %v146_v10  ;;  %v151_v22 = vadd.f32 161.58583, %v147_v12  ;;  %v107_v26 = vmul.f32 -39.69683, %v533_v7 }
  0x3c   :  { %v152_v27 = vmul.f32 %v148_v15, %v521_v4  ;;  %v108_v29 = vadd.f32 220.9461, %v104_v17  ;;  %v153_v30 = vmul.f32 %v149_v18, %v525_v5  ;;  %v204_v32 = vmax.f32 %v545_v20, 1e-12 }
  0x3d   :  { %v154_v31 = vmul.f32 %v150_v19, %v529_v6  ;;  %v109_v33 = vadd.f32 220.9461, %v105_v21  ;;  %v155_v34 = vmul.f32 %v151_v22, %v533_v7  ;;  %v205_v35 = vmax.f32 %v549_v23, 1e-12 }
  0x3e   :  { %v110_v36 = vadd.f32 220.9461, %v106_v24  ;;  %v206_v37 = vmax.f32 %v553_v25, 1e-12  ;;  %v111_v38 = vadd.f32 220.9461, %v107_v26  ;;  %v112_v41 = vmul.f32 %v108_v29, %v521_v4 }
  0x3f   :  { %v156_v39 = vadd.f32 -155.69897, %v152_v27  ;;  %v207_v40 = vmax.f32 %v558_v28, 1e-12  ;;  %v157_v42 = vadd.f32 -155.69897, %v153_v30  ;;  %387 = vlog2.f32 %v204_v32 }
  0x40   :  { %v158_v43 = vadd.f32 -155.69897, %v154_v31  ;;  %v113_v44 = vmul.f32 %v109_v33, %v525_v5  ;;  %v159_v45 = vadd.f32 -155.69897, %v155_v34  ;;  %389 = vlog2.f32 %v205_v35 }
  0x41   :  { %v114_v46 = vmul.f32 %v110_v36, %v529_v6  ;;  %391 = vlog2.f32 %v206_v37  ;;  %v115_v47 = vmul.f32 %v111_v38, %v533_v7  ;;  %v160_v48 = vmul.f32 %v156_v39, %v521_v4 }
  0x42   :  { %393 = vlog2.f32 %v207_v40  ;;  %v116_v49 = vadd.f32 -275.9285, %v112_v41  ;;  %v161_v50 = vmul.f32 %v157_v42, %v525_v5  ;;  %v162_v51 = vmul.f32 %v158_v43, %v529_v6 }
  0x43   :  { %v117_v52 = vadd.f32 -275.9285, %v113_v44  ;;  %v163_v53 = vmul.f32 %v159_v45, %v533_v7  ;;  %v118_v54 = vadd.f32 -275.9285, %v114_v46  ;;  %v119_v55 = vadd.f32 -275.9285, %v115_v47 }
  0x44   :  { %v164_v56 = vadd.f32 66.801315, %v160_v48  ;;  %v120_v57 = vmul.f32 %v116_v49, %v521_v4  ;;  %v165_v58 = vadd.f32 66.801315, %v161_v50  ;;  %v166_v59 = vadd.f32 66.801315, %v162_v51 }
  0x45   :  { %v121_v8 = vmul.f32 %v117_v52, %v525_v5  ;;  %v167_v9 = vadd.f32 66.801315, %v163_v53  ;;  %v122_v11 = vmul.f32 %v118_v54, %v529_v6  ;;  %v123_v13 = vmul.f32 %v119_v55, %v533_v7 }
  0x46   :  { %v168_v14 = vmul.f32 %v164_v56, %v521_v4  ;;  %v124_v17 = vadd.f32 138.35776, %v120_v57  ;;  %v169_v18 = vmul.f32 %v165_v58, %v525_v5  ;;  %v170_v19 = vmul.f32 %v166_v59, %v529_v6 }
  0x47   :  { %v125_v24 = vadd.f32 138.35776, %v121_v8  ;;  %v171_v26 = vmul.f32 %v167_v9, %v533_v7  ;;  %v126_v30 = vadd.f32 138.35776, %v122_v11  ;;  %v127_v34 = vadd.f32 138.35776, %v123_v13 }
  0x48   :  { %v172_v36 = vadd.f32 -13.280682, %v168_v14  ;;  %v173_v39 = vadd.f32 -13.280682, %v169_v18  ;;  %v174_v41 = vadd.f32 -13.280682, %v170_v19  ;;  %v128_v44 = vmul.f32 %v124_v17, %v521_v4 }
  0x49   :  { %v388_v10 = vpop.eup %387  ;;  %v175_v43 = vadd.f32 -13.280682, %v171_v26  ;;  %v129_v45 = vmul.f32 %v125_v24, %v525_v5  ;;  %v130_v46 = vmul.f32 %v126_v30, %v529_v6  ;;  %v131_v47 = vmul.f32 %v127_v34, %v533_v7 }
  0x4a   :  { %v390_v12 = vpop.eup %389  ;;  %v209_v15 = vmul.f32 0.6931472, %v388_v10  ;;  %v176_v48 = vmul.f32 %v172_v36, %v521_v4  ;;  %v177_v49 = vmul.f32 %v173_v39, %v525_v5  ;;  %v178_v50 = vmul.f32 %v174_v41, %v529_v6 }
  0x4b   :  { %v392_v16 = vpop.eup %391  ;;  %v211_v21 = vmul.f32 0.6931472, %v390_v12  ;;  %v179_v51 = vmul.f32 %v175_v43, %v533_v7  ;;  %v599_v52 = vadd.f32 -30.664799, %v128_v44  ;;  %v601_v53 = vadd.f32 -30.664799, %v129_v45 }
  0x4c   :  { %v394_v22 = vpop.eup %393  ;;  %v213_v27 = vmul.f32 0.6931472, %v392_v16  ;;  %v216_v29 = vmul.f32 -2.0, %v209_v15  ;;  %v603_v54 = vadd.f32 -30.664799, %v130_v46  ;;  %v607_v56 = vadd.f32 1.0, %v176_v48 }
  0x4d   :  { %v215_v31 = vmul.f32 0.6931472, %v394_v22  ;;  %v217_v33 = vmul.f32 -2.0, %v211_v21  ;;  %v605_v55 = vadd.f32 -30.664799, %v131_v47  ;;  %v609_v57 = vadd.f32 1.0, %v177_v49 }
  0x4e   :  { %v218_v38 = vmul.f32 -2.0, %v213_v27  ;;  %395 = vrsqrt.f32 %v216_v29  ;;  %v611_v58 = vadd.f32 1.0, %v178_v50  ;;  %v613_v8 = vadd.f32 1.0, %v179_v51 }
  0x4f   :  { %v219_v42 = vmul.f32 -2.0, %v215_v31  ;;  %397 = vrsqrt.f32 %v217_v33  ;;  %vm222_vm0 = vcmp.eq.f32.partialorder %v216_v29, inf  ;;  %vm224_vm1 = vcmp.eq.f32.partialorder %v216_v29, 0.0 }
  0x50   :  { %399 = vrsqrt.f32 %v218_v38  ;;  %v225_v9 = vand.u32 2147483648, %v216_v29  ;;  %vm229_vm2 = vcmp.eq.f32.partialorder %v217_v33, inf  ;;  %vm231_vm3 = vcmp.eq.f32.partialorder %v217_v33, 0.0 }
  0x51   :  { %401 = vrsqrt.f32 %v219_v42  ;;  %v232_v12 = vand.u32 2147483648, %v217_v33  ;;  %vm236_vm4 = vcmp.eq.f32.partialorder %v218_v38, inf  ;;  %vm238_vm5 = vcmp.eq.f32.partialorder %v218_v38, 0.0 }
  0x52   :  { %v239_v15 = vand.u32 2147483648, %v218_v38  ;;  %vm243_vm6 = vcmp.eq.f32.partialorder %v219_v42, inf  ;;  %v246_v19 = vand.u32 2147483648, %v219_v42  ;;  %vm245_vm7 = vcmp.eq.f32.partialorder %v219_v42, 0.0 }
  0x53   :  { %403 = vrcp.f32 %v607_v56  ;;  %vm328_vm8 = vcmp.lt.f32.partialorder %v499_v60, 0.5  ;;  %vm329_vm9 = vcmp.lt.f32.partialorder %v501_v61, 0.5  ;;  %vm330_vm10 = vcmp.lt.f32.partialorder %v503_v62, 0.5 }
  0x54   :  { %405 = vrcp.f32 %v609_v57  ;;  %v136_v57 = vmul.f32 %v599_v52, %v521_v4  ;;  %vm331_vm11 = vcmp.lt.f32.partialorder %v505_v63, 0.5  ;;  %vm340_vm12 = vcmp.lt.f32.partialorder %v204_v32, 0.02425 }
  0x55   :  { %407 = vrcp.f32 %v611_v58  ;;  %v138_v58 = vmul.f32 %v603_v54, %v529_v6  ;;  %vm341_vm13 = vcmp.lt.f32.partialorder %v205_v35, 0.02425  ;;  %vm342_vm14 = vcmp.lt.f32.partialorder %v206_v37, 0.02425 }
  0x56   :  { %409 = vrcp.f32 %v613_v8  ;;  %v139_v8 = vmul.f32 %v605_v55, %v533_v7  ;;  %vm343_vm15 = vcmp.lt.f32.partialorder %v207_v40, 0.02425 }
  0x58   :  { %v396_v59 = vpop.eup %395  ;;  %v143_v6 = vadd.f32 2.5066283, %v139_v8 }
  0x59   :  { %v398_v10 = vpop.eup %397  ;;  %v221_v11 = vmul.f32 %v396_v59, %v216_v29 }
  0x5a   :  { %v400_v13 = vpop.eup %399  ;;  %v228_v14 = vmul.f32 %v398_v10, %v217_v33 }
  0x5b   :  { %v402_v16 = vpop.eup %401  ;;  %v223_v17 = vsel %vm222_vm0, %v216_v29, %v221_v11  ;;  %v235_v18 = vmul.f32 %v400_v13, %v218_v38 }
  0x5c   :  { %v616_v21 = vsel %vm224_vm1, %v225_v9, %v223_v17  ;;  %v230_v22 = vsel %vm229_vm2, %v217_v33, %v228_v14  ;;  %v242_v24 = vmul.f32 %v402_v16, %v219_v42 }
  0x5d   :  { %v619_v26 = vsel %vm231_vm3, %v232_v12, %v230_v22  ;;  %v237_v27 = vsel %vm236_vm4, %v218_v38, %v235_v18  ;;  %v248_v30 = vmul.f32 -0.007784894, %v616_v21  ;;  %v288_v31 = vmul.f32 0.007784696, %v616_v21 }
  0x5e   :  { %v623_v34 = vsel %vm238_vm5, %v239_v15, %v237_v27  ;;  %v244_v36 = vsel %vm243_vm6, %v219_v42, %v242_v24  ;;  %v249_v39 = vmul.f32 -0.007784894, %v619_v26  ;;  %v289_v29 = vmul.f32 0.007784696, %v619_v26 }
  0x5f   :  { %v627_v41 = vsel %vm245_vm7, %v246_v19, %v244_v36  ;;  %v250_v43 = vmul.f32 -0.007784894, %v623_v34  ;;  %v252_v44 = vadd.f32 -0.32239646, %v248_v30  ;;  %v290_v33 = vmul.f32 0.007784696, %v623_v34 }
  0x60   :  { %v251_v38 = vmul.f32 -0.007784894, %v627_v41  ;;  %v253_v45 = vadd.f32 -0.32239646, %v249_v39  ;;  %v291_v46 = vmul.f32 0.007784696, %v627_v41 }
  0x61   :  { %v254_v47 = vadd.f32 -0.32239646, %v250_v43  ;;  %v256_v48 = vmul.f32 %v252_v44, %v616_v21  ;;  %v292_v42 = vadd.f32 0.32246712, %v288_v31  ;;  %v293_v49 = vadd.f32 0.32246712, %v289_v29 }
  0x62   :  { %v255_v50 = vadd.f32 -0.32239646, %v251_v38  ;;  %v257_v51 = vmul.f32 %v253_v45, %v619_v26  ;;  %v294_v59 = vadd.f32 0.32246712, %v290_v33  ;;  %v295_v9 = vadd.f32 0.32246712, %v291_v46 }
  0x63   :  { %v258_v10 = vmul.f32 %v254_v47, %v623_v34  ;;  %v260_v11 = vadd.f32 -2.4007583, %v256_v48  ;;  %v296_v12 = vmul.f32 %v292_v42, %v616_v21  ;;  %v297_v13 = vmul.f32 %v293_v49, %v619_v26 }
  0x64   :  { %v259_v14 = vmul.f32 %v255_v50, %v627_v41  ;;  %v261_v15 = vadd.f32 -2.4007583, %v257_v51  ;;  %v298_v16 = vmul.f32 %v294_v59, %v623_v34  ;;  %v299_v17 = vmul.f32 %v295_v9, %v627_v41 }
  0x65   :  { %v262_v18 = vadd.f32 -2.4007583, %v258_v10  ;;  %v264_v19 = vmul.f32 %v260_v11, %v616_v21  ;;  %v300_v22 = vadd.f32 2.4451342, %v296_v12  ;;  %v301_v24 = vadd.f32 2.4451342, %v297_v13 }
  0x66   :  { %v263_v27 = vadd.f32 -2.4007583, %v259_v14  ;;  %v265_v30 = vmul.f32 %v261_v15, %v619_v26  ;;  %v302_v31 = vadd.f32 2.4451342, %v298_v16  ;;  %v303_v36 = vadd.f32 2.4451342, %v299_v17 }
  0x67   :  { %v266_v39 = vmul.f32 %v262_v18, %v623_v34  ;;  %v268_v29 = vadd.f32 -2.5497324, %v264_v19  ;;  %v304_v43 = vmul.f32 %v300_v22, %v616_v21  ;;  %v305_v44 = vmul.f32 %v301_v24, %v619_v26 }
  0x68   :  { %v267_v33 = vmul.f32 %v263_v27, %v627_v41  ;;  %v269_v38 = vadd.f32 -2.5497324, %v265_v30  ;;  %v306_v45 = vmul.f32 %v302_v31, %v623_v34  ;;  %v307_v46 = vmul.f32 %v303_v36, %v627_v41 }
  0x69   :  { %v270_v47 = vadd.f32 -2.5497324, %v266_v39  ;;  %v308_v48 = vadd.f32 3.7544086, %v304_v43  ;;  %v309_v42 = vadd.f32 3.7544086, %v305_v44  ;;  %v272_v50 = vmul.f32 %v268_v29, %v616_v21 }
  0x6a   :  { %v271_v49 = vadd.f32 -2.5497324, %v267_v33  ;;  %v310_v51 = vadd.f32 3.7544086, %v306_v45  ;;  %v311_v59 = vadd.f32 3.7544086, %v307_v46  ;;  %v273_v9 = vmul.f32 %v269_v38, %v619_v26 }
  0x6b   :  { %v312_v10 = vmul.f32 %v308_v48, %v616_v21  ;;  %v313_v11 = vmul.f32 %v309_v42, %v619_v26  ;;  %v274_v12 = vmul.f32 %v270_v47, %v623_v34  ;;  %v276_v17 = vadd.f32 4.3746643, %v272_v50 }
  0x6c   :  { %v314_v13 = vmul.f32 %v310_v51, %v623_v34  ;;  %v315_v14 = vmul.f32 %v311_v59, %v627_v41  ;;  %v275_v15 = vmul.f32 %v271_v49, %v627_v41  ;;  %v277_v22 = vadd.f32 4.3746643, %v273_v9 }
  0x6d   :  { %v316_v16 = vadd.f32 1.0, %v312_v10  ;;  %v317_v56 = vadd.f32 1.0, %v313_v11  ;;  %v137_v24 = vmul.f32 %v601_v53, %v525_v5  ;;  %v278_v27 = vadd.f32 4.3746643, %v274_v12  ;;  %v404_v5 = vpop.eup %403 }
  0x6e   :  { %v318_v18 = vadd.f32 1.0, %v314_v13  ;;  %v319_v19 = vadd.f32 1.0, %v315_v14  ;;  %v279_v30 = vadd.f32 4.3746643, %v275_v15  ;;  %v280_v31 = vmul.f32 %v276_v17, %v616_v21  ;;  %v406_v43 = vpop.eup %405  ;;  %v353_v17 = vld [vmem:[#allocation3 + $0x8] sm:$0xff] }
  0x6f   :  { %411 = vrcp.f32 %v316_v16  ;;  %v140_v36 = vadd.f32 2.5066283, %v136_v57  ;;  %v281_v4 = vmul.f32 %v277_v22, %v619_v26  ;;  %v141_v52 = vadd.f32 2.5066283, %v137_v24  ;;  %v408_v44 = vpop.eup %407  ;;  %v352_v16 = vld [vmem:[#allocation3] sm:$0xff] }
  0x70   :  { %413 = vrcp.f32 %v317_v56  ;;  %v282_v39 = vmul.f32 %v278_v27, %v623_v34  ;;  %v142_v53 = vadd.f32 2.5066283, %v138_v58  ;;  %v283_v29 = vmul.f32 %v279_v30, %v627_v41  ;;  %v410_v55 = vpop.eup %409 }
  0x71   :  { %415 = vrcp.f32 %v318_v18  ;;  %v284_v54 = vadd.f32 2.938164, %v280_v31  ;;  %v184_v33 = vmul.f32 %v508_v0, %v140_v36  ;;  %v285_v7 = vadd.f32 2.938164, %v281_v4 }
  0x72   :  { %417 = vrcp.f32 %v319_v19  ;;  %v185_v21 = vmul.f32 %v511_v1, %v141_v52  ;;  %v286_v38 = vadd.f32 2.938164, %v282_v39  ;;  %v186_v26 = vmul.f32 %v514_v2, %v142_v53 }
  0x73   :  { %v287_v46 = vadd.f32 2.938164, %v283_v29  ;;  %v187_v47 = vmul.f32 %v517_v3, %v143_v6  ;;  %v189_v42 = vmul.f32 %v404_v5, %v184_v33 }
  0x74   :  { %v191_v49 = vmul.f32 %v406_v43, %v185_v21  ;;  %v193_v3 = vmul.f32 %v408_v44, %v186_v26 }
  0x75   :  { %v195_v9 = vmul.f32 %v410_v55, %v187_v47 }
  0x79   :  { %v412_v45 = vpop.eup %411 }
  0x7a   :  { %v414_v34 = vpop.eup %413  ;;  %v321_v48 = vmul.f32 %v412_v45, %v284_v54 }
  0x7b   :  { %v416_v41 = vpop.eup %415  ;;  %v323_v0 = vmul.f32 %v414_v34, %v285_v7 }
  0x7c   :  { %v418_v1 = vpop.eup %417  ;;  %v325_v50 = vmul.f32 %v416_v41, %v286_v38  ;;  %v332_v2 = vsub.f32 0.0, %v321_v48 }
  0x7d   :  { %v327_v51 = vmul.f32 %v418_v1, %v287_v46  ;;  %v333_v59 = vsub.f32 0.0, %v323_v0 }
  0x7e   :  { %v334_v10 = vsub.f32 0.0, %v325_v50  ;;  %v336_v11 = vsel %vm328_vm8, %v321_v48, %v332_v2 }
  0x7f   :  { %v335_v12 = vsub.f32 0.0, %v327_v51  ;;  %v337_v13 = vsel %vm329_vm9, %v323_v0, %v333_v59  ;;  %v344_v20 = vsel %vm340_vm12, %v336_v11, %v189_v42 }
  0x80   :  { %v338_v23 = vsel %vm330_vm10, %v325_v50, %v334_v10  ;;  %v345_v32 = vsel %vm341_vm13, %v337_v13, %v191_v49  ;;  %v348_v35 = vmul.f32 0.05, %v344_v20 }
  0x81   :  { %v339_v60 = vsel %vm331_vm11, %v327_v51, %v335_v12  ;;  %v346_v14 = vsel %vm342_vm14, %v338_v23, %v193_v3  ;;  %v349_v15 = vmul.f32 0.05, %v345_v32 }
  0x82   :  { %v347_v25 = vsel %vm343_vm15, %v339_v60, %v195_v9  ;;  %v350_v37 = vmul.f32 0.05, %v346_v14 }
  0x83   :  { %v351_v56 = vmul.f32 0.05, %v347_v25  ;;  %v358_v61 = vcombine.low %v348_v35, %v349_v15 }
  0x85   :  { %v359_v28 = vcombine.low %v350_v37, %v351_v56  ;;  %v362_v40 = vadd.f32 %v358_v61, %v352_v16 }
  0x87   :  { %v363_v18 = vadd.f32 %v359_v28, %v353_v17  ;;  %364 = vst [vmem:[#allocation6] sm:$0xff] %v362_v40 }
  0x89   :  { %365 = vst [vmem:[#allocation6 + $0x8] sm:$0xff] %v363_v18 }
  0x8a   :  { %452 = shalt.err (!%p449_p12)
}
  0x8b   :  { %s453_s28 = scalar_lea.hbm %s711_s2, 256 }
  0x8c   :  { %p454_p13 = scmp.ne.s32.totalorder %s711_s2, %s453_s28  ;;  %p457_p0 = scmp.lt.u32.totalorder %s453_s28, %s711_s2 }
  0x8e   :  { %p459_p1 = pnand %p457_p0, %p454_p13 }
  0x90   :  { %462 = shalt.err (!%p459_p1)
}
  0x91   :  { %375 = dma.vmem_to_hbm [thread:$0]  %s373_s1, 256, %s711_s2, [#allocation5]  }
  0x92   :  { %465 = dma.done.wait [#allocation5], 256  }
  0x93   :  { %466 = vsyncadd [#allocation5], 4294967040 }
  0x94   :  { %379 = vsyncpa [#allocation4], 1 }
  0x95   :  { %380 = vsyncpa [#allocation5], 1 }

</bundles_post_ra>
